<compile_context>
chip_gen: v6e
topology: v6e:2x2x1
jax: 0.10.0
libtpu: 0.0.40
codegen_flags: <defaults>
</compile_context>

<pallas_src>
import functools

import jax
import jax.numpy as jnp
from jax.experimental import pallas as pl
from jax.experimental.pallas import tpu as pltpu

_EPS = 1e-5
_TARGET_BLOCK_BYTES = 2 * 1024 * 1024     # ~2 MiB / input block (safe on v7x)
_VMEM_LIMIT_BYTES = 32 * 1024 * 1024      # within v7x's 64 MiB physical VMEM
_MIN_GRID_STEPS = 8                       # give both v7x TCs several pipelined steps


def _round_up(x: int, m: int) -> int:
    return ((x + m - 1) // m) * m


def _sublane_pack(dtype) -> int:
    itemsize = jnp.dtype(dtype).itemsize
    if itemsize >= 4:
        return 8
    if itemsize == 2:
        return 16
    return 32


# ---------------------------------------------------------------------------
# 4-D (NCHW) path: channels on the sublane axis, spatial (h*w) axis lane-dense.
# ---------------------------------------------------------------------------
def _ln_nchw_kernel(x_ref, w_ref, *rest, with_bias: bool):
    if with_bias:
        b_ref, o_ref = rest
    else:
        (o_ref,) = rest
    x = x_ref[...].astype(jnp.float32)                  # (C, T)
    mu = jnp.mean(x, axis=0, keepdims=True)             # (1, T)
    xc = x - mu
    var = jnp.mean(xc * xc, axis=0, keepdims=True)      # (1, T)  two-pass: stable
    inv = jax.lax.rsqrt(var + _EPS)                     # EUP
    w = w_ref[...].astype(jnp.float32)                  # (C, 1)
    if with_bias:
        b = b_ref[...].astype(jnp.float32)               # (C, 1)
        out = xc * inv * w + b
    else:
        # BiasFree: variance is mean-centered but x itself is NOT centered.
        out = x * inv * w
    o_ref[...] = out.astype(o_ref.dtype)


def _layernorm_nchw(x, weight, bias, *, with_bias: bool):
    b, c, h, w = x.shape
    hw = h * w
    x3 = x.reshape(b, c, hw)                             # contiguous, free reshape
    itemsize = jnp.dtype(x.dtype).itemsize

    # Note: with c < 8 the sublane axis of each vreg is under-occupied; for
    # typical restormer dims (48/96/192/384) this does not apply.
    tile_hw = max(128, (_TARGET_BLOCK_BYTES // max(1, c * itemsize)) // 128 * 128)
    tile_hw = min(tile_hw, _round_up(hw, 128))
    # Ensure enough grid steps so both v7x TensorCores get pipelined work.
    while tile_hw > 128 and b * pl.cdiv(hw, tile_hw) < _MIN_GRID_STEPS:
        tile_hw = max(128, _round_up(tile_hw // 2, 128))

    grid = (b, pl.cdiv(hw, tile_hw))                     # ragged hw: last block OOB-masked

    in_specs = [
        pl.BlockSpec((pl.Squeezed(), c, tile_hw), lambda i, j: (i, 0, j)),
        pl.BlockSpec((c, 1), lambda i, j: (0, 0)),
    ]
    args = [x3, weight.reshape(c, 1)]
    if with_bias:
        in_specs.append(pl.BlockSpec((c, 1), lambda i, j: (0, 0)))
        args.append(bias.reshape(c, 1))

    n_elems = b * c * hw
    cost = pl.CostEstimate(
        flops=7 * n_elems,
        transcendentals=b * hw,
        bytes_accessed=2 * n_elems * itemsize,
    )

    kernel = functools.partial(_ln_nchw_kernel, with_bias=with_bias)
    y3 = pl.pallas_call(
        kernel,
        out_shape=jax.ShapeDtypeStruct((b, c, hw), x.dtype),
        grid_spec=pltpu.PrefetchScalarGridSpec(
            num_scalar_prefetch=0,
            grid=grid,
            in_specs=in_specs,
            out_specs=pl.BlockSpec((pl.Squeezed(), c, tile_hw),
                                   lambda i, j: (i, 0, j)),
        ),
        compiler_params=pltpu.CompilerParams(
            dimension_semantics=("parallel", "parallel"),
            vmem_limit_bytes=_VMEM_LIMIT_BYTES,
        ),
        cost_estimate=cost,
    )(*args)
    return y3.reshape(b, c, h, w)


# ---------------------------------------------------------------------------
# 3-D path (b, s, c): rows on sublanes, full-extent channel axis on lanes.
# ---------------------------------------------------------------------------
def _ln_rows_kernel(x_ref, w_ref, *rest, with_bias: bool):
    if with_bias:
        b_ref, o_ref = rest
    else:
        (o_ref,) = rest
    x = x_ref[...].astype(jnp.float32)                   # (TM, C)  C = full extent
    mu = jnp.mean(x, axis=-1, keepdims=True)
    xc = x - mu
    var = jnp.mean(xc * xc, axis=-1, keepdims=True)
    inv = jax.lax.rsqrt(var + _EPS)
    w = w_ref[...].astype(jnp.float32)                   # (1, C)
    if with_bias:
        b = b_ref[...].astype(jnp.float32)
        out = xc * inv * w + b
    else:
        out = x * inv * w
    o_ref[...] = out.astype(o_ref.dtype)


def _layernorm_rows(x2d, weight, bias, *, with_bias: bool):
    n, c = x2d.shape
    itemsize = jnp.dtype(x2d.dtype).itemsize
    sub = _sublane_pack(x2d.dtype)

    tile_rows = max(sub, (_TARGET_BLOCK_BYTES // max(1, c * itemsize)) // sub * sub)
    tile_rows = min(tile_rows, _round_up(n, sub))
    while tile_rows > sub and pl.cdiv(n, tile_rows) < _MIN_GRID_STEPS:
        tile_rows = max(sub, _round_up(tile_rows // 2, sub))

    grid = (pl.cdiv(n, tile_rows),)                      # ragged n: OOB rows store-masked

    in_specs = [
        # Full-extent last dim satisfies the (8,128) rule; Mosaic lane-masks
        # the tail so the lane-axis reduction stays exact (no channel padding).
        pl.BlockSpec((tile_rows, c), lambda i: (i, 0)),
        pl.BlockSpec((1, c), lambda i: (0, 0)),
    ]
    args = [x2d, weight.reshape(1, c)]
    if with_bias:
        in_specs.append(pl.BlockSpec((1, c), lambda i: (0, 0)))
        args.append(bias.reshape(1, c))

    n_elems = n * c
    cost = pl.CostEstimate(
        flops=7 * n_elems,
        transcendentals=n,
        bytes_accessed=2 * n_elems * itemsize,
    )

    kernel = functools.partial(_ln_rows_kernel, with_bias=with_bias)
    y = pl.pallas_call(
        kernel,
        out_shape=jax.ShapeDtypeStruct((n, c), x2d.dtype),
        grid_spec=pltpu.PrefetchScalarGridSpec(
            num_scalar_prefetch=0,
            grid=grid,
            in_specs=in_specs,
            out_specs=pl.BlockSpec((tile_rows, c), lambda i: (i, 0)),
        ),
        compiler_params=pltpu.CompilerParams(
            dimension_semantics=("parallel",),
            vmem_limit_bytes=_VMEM_LIMIT_BYTES,
        ),
        cost_estimate=cost,
    )(*args)
    return y


# ---------------------------------------------------------------------------
# Public entry point matching LayerNorm.forward of the PyTorch module.
# ---------------------------------------------------------------------------
def layernorm(x, weight, bias=None, *, layernorm_type: str = "WithBias"):
    with_bias = layernorm_type != "BiasFree"
    if with_bias and bias is None:
        raise ValueError("WithBias LayerNorm requires a bias parameter")
    if x.ndim == 4:
        return _layernorm_nchw(x, weight, bias, with_bias=with_bias)
    lead = x.shape[:-1]
    c = x.shape[-1]
    n = 1
    for d in lead:
        n *= d
    y = _layernorm_rows(x.reshape(n, c), weight, bias, with_bias=with_bias)
    return y.reshape(*lead, c)


def _ref_layernorm(x, weight, bias, *, layernorm_type: str = "WithBias"):
    """Pure-JAX reference replicating the PyTorch module exactly."""
    def body(x3):
        mu = jnp.mean(x3, axis=-1, keepdims=True)
        var = jnp.mean((x3 - mu) ** 2, axis=-1, keepdims=True)
        if layernorm_type == "BiasFree":
            return x3 / jnp.sqrt(var + _EPS) * weight
        return (x3 - mu) / jnp.sqrt(var + _EPS) * weight + bias

    if x.ndim == 4:
        b, c, h, w = x.shape
        x3 = jnp.transpose(x, (0, 2, 3, 1)).reshape(b, h * w, c)
        y3 = body(x3)
        return jnp.transpose(y3.reshape(b, h, w, c), (0, 3, 1, 2))
    return body(x)


if __name__ == "__main__":
    ok = True
    key = jax.random.PRNGKey(0)

    def check(x, weight, bias, ln_type):
        global ok
        out = jax.block_until_ready(
            layernorm(x, weight, bias, layernorm_type=ln_type))
        ref = _ref_layernorm(x, weight, bias, layernorm_type=ln_type)
        err = float(jnp.max(jnp.abs(out - ref)))
        if out.shape != x.shape or err > 1e-4:
            ok = False
            print(f"FAIL shape={x.shape} type={ln_type} err={err}")

    # 4-D NCHW case (the module's main path).
    b, c, h, w = 2, 4, 16, 16
    k0, k1, k2 = jax.random.split(key, 3)
    x4 = jax.random.normal(k0, (b, c, h, w), dtype=jnp.float32)
    weight4 = 1.0 + 0.1 * jax.random.normal(k1, (c,), dtype=jnp.float32)
    bias4 = 0.1 * jax.random.normal(k2, (c,), dtype=jnp.float32)
    for ln_type in ("WithBias", "BiasFree"):
        check(x4, weight4, bias4, ln_type)

    # 4-D ragged spatial case (exercises the masked last HW block, no padding).
    x4r = jax.random.normal(k0, (1, 4, 10, 13), dtype=jnp.float32)
    check(x4r, weight4, bias4, "WithBias")

    # 3-D (b, s, c) case.
    bs, s, cc = 2, 8, 32
    k3, k4, k5 = jax.random.split(k1, 3)
    x3 = jax.random.normal(k3, (bs, s, cc), dtype=jnp.float32)
    weight3 = 1.0 + 0.1 * jax.random.normal(k4, (cc,), dtype=jnp.float32)
    bias3 = 0.1 * jax.random.normal(k5, (cc,), dtype=jnp.float32)
    for ln_type in ("WithBias", "BiasFree"):
        check(x3, weight3, bias3, ln_type)

    # 3-D ragged case (rows not multiple of 8, channels not multiple of 128).
    x3r = jax.random.normal(k3, (3, 7, 33), dtype=jnp.float32)
    w3r = 1.0 + 0.1 * jax.random.normal(k4, (33,), dtype=jnp.float32)
    b3r = 0.1 * jax.random.normal(k5, (33,), dtype=jnp.float32)
    check(x3r, w3r, b3r, "WithBias")

    if ok:
        print("KERNEL_OK")
</pallas_src>

<mosaic_0001>
module attributes {stable_mosaic.version = 11 : i64} {
  func.func @_ln_nchw_kernel(%arg0: i32, %arg1: i32, %arg2: memref<1x4x128xf32, #tpu.memory_space<vmem>>, %arg3: memref<4x1xf32, #tpu.memory_space<vmem>>, %arg4: memref<4x1xf32, #tpu.memory_space<vmem>>, %arg5: memref<1x4x128xf32, #tpu.memory_space<vmem>>) attributes {dimension_semantics = [#tpu.dimension_semantics<parallel>, #tpu.dimension_semantics<parallel>], iteration_bounds = array<i64: 2, 2>, scalar_prefetch = 0 : i64, scratch_operands = 0 : i64, tpu.core_type = #tpu.core_type<tc>, window_params = [{transform_indices = @transform_0, window_bounds = array<i64: 1, 4, 128>}, {pipeline_mode = #tpu.pipeline_mode<synchronous>, transform_indices = @transform_1, window_bounds = array<i64: 4, 1>}, {pipeline_mode = #tpu.pipeline_mode<synchronous>, transform_indices = @transform_2, window_bounds = array<i64: 4, 1>}, {transform_indices = @transform_3, window_bounds = array<i64: 1, 4, 128>}]} {
    %c0 = arith.constant 0 : index
    %c0_0 = arith.constant 0 : index
    %c0_1 = arith.constant 0 : index
    %0 = vector.load %arg2[%c0, %c0_0, %c0_1] : memref<1x4x128xf32, #tpu.memory_space<vmem>>, vector<1x4x128xf32>
    %1 = vector.shape_cast %0 : vector<1x4x128xf32> to vector<4x128xf32>
    %cst = arith.constant dense<0.000000e+00> : vector<128xf32>
    %2 = vector.multi_reduction <add>, %1, %cst [0] : vector<4x128xf32> to vector<128xf32>
    %3 = vector.shape_cast %2 : vector<128xf32> to vector<1x128xf32>
    %cst_2 = arith.constant 4.000000e+00 : f32
    %4 = vector.broadcast %cst_2 : f32 to vector<1x128xf32>
    %5 = arith.divf %3, %4 : vector<1x128xf32>
    %6 = vector.broadcast %5 : vector<1x128xf32> to vector<4x128xf32>
    %7 = arith.subf %1, %6 : vector<4x128xf32>
    %8 = arith.mulf %7, %7 : vector<4x128xf32>
    %cst_3 = arith.constant dense<0.000000e+00> : vector<128xf32>
    %9 = vector.multi_reduction <add>, %8, %cst_3 [0] : vector<4x128xf32> to vector<128xf32>
    %10 = vector.shape_cast %9 : vector<128xf32> to vector<1x128xf32>
    %cst_4 = arith.constant 4.000000e+00 : f32
    %11 = vector.broadcast %cst_4 : f32 to vector<1x128xf32>
    %12 = arith.divf %10, %11 : vector<1x128xf32>
    %cst_5 = arith.constant 9.99999974E-6 : f32
    %13 = vector.broadcast %cst_5 : f32 to vector<1x128xf32>
    %14 = arith.addf %12, %13 : vector<1x128xf32>
    %15 = math.rsqrt %14 : vector<1x128xf32>
    %c0_6 = arith.constant 0 : index
    %c0_7 = arith.constant 0 : index
    %16 = vector.load %arg3[%c0_6, %c0_7] : memref<4x1xf32, #tpu.memory_space<vmem>>, vector<4x1xf32>
    %c0_8 = arith.constant 0 : index
    %c0_9 = arith.constant 0 : index
    %17 = vector.load %arg4[%c0_8, %c0_9] : memref<4x1xf32, #tpu.memory_space<vmem>>, vector<4x1xf32>
    %18 = vector.broadcast %15 : vector<1x128xf32> to vector<4x128xf32>
    %19 = arith.mulf %7, %18 : vector<4x128xf32>
    %20 = vector.broadcast %16 : vector<4x1xf32> to vector<4x128xf32>
    %21 = arith.mulf %19, %20 : vector<4x128xf32>
    %22 = vector.broadcast %17 : vector<4x1xf32> to vector<4x128xf32>
    %23 = arith.addf %21, %22 : vector<4x128xf32>
    %c0_10 = arith.constant 0 : index
    %c0_11 = arith.constant 0 : index
    %c0_12 = arith.constant 0 : index
    %24 = vector.load %arg5[%c0_10, %c0_11, %c0_12] : memref<1x4x128xf32, #tpu.memory_space<vmem>>, vector<1x4x128xf32>
    %25 = vector.shape_cast %24 : vector<1x4x128xf32> to vector<4x128xf32>
    %26 = vector.shape_cast %23 : vector<4x128xf32> to vector<1x4x128xf32>
    tpu.vector_store %arg5[%c0_10, %c0_11, %c0_12], %26 {strides = array<i32>} : memref<1x4x128xf32, #tpu.memory_space<vmem>>, vector<1x4x128xf32>,
    return
  }
  func.func @transform_0(%arg0: i32, %arg1: i32) -> (i32, i32, i32) {
    %c0_i32 = arith.constant 0 : i32
    %c0_i32_0 = arith.constant 0 : i32
    return %arg0, %c0_i32, %arg1 : i32, i32, i32
  }
  func.func @transform_1(%arg0: i32, %arg1: i32) -> (i32, i32) {
    %c0_i32 = arith.constant 0 : i32
    %c0_i32_0 = arith.constant 0 : i32
    %c0_i32_1 = arith.constant 0 : i32
    return %c0_i32, %c0_i32_0 : i32, i32
  }
  func.func @transform_2(%arg0: i32, %arg1: i32) -> (i32, i32) {
    %c0_i32 = arith.constant 0 : i32
    %c0_i32_0 = arith.constant 0 : i32
    %c0_i32_1 = arith.constant 0 : i32
    return %c0_i32, %c0_i32_0 : i32, i32
  }
  func.func @transform_3(%arg0: i32, %arg1: i32) -> (i32, i32, i32) {
    %c0_i32 = arith.constant 0 : i32
    %c0_i32_0 = arith.constant 0 : i32
    return %arg0, %c0_i32, %arg1 : i32, i32, i32
  }
}

</mosaic_0001>

<bundles_post_ra>
// kernel: tpu_custom_call.1
= control target key start
LH: loop header
LB: loop body
LE: loop exit
PB: predicated region body
PF: predicated region fallthrough
CT: control target
= control target key end

     0   :  { %8 = vsyncpa [#allocation3], 0  ;;  %s756_s0 = inlined_call_operand.hbm [shape: f32[2,4,256], index: 0, kind: input, shape index: {}]   ;;  %s757_s1 = inlined_call_operand.vmem [shape: f32[4,1], index: 1, kind: input, shape index: {}]   ;;  %s758_s2 = inlined_call_operand.vmem [shape: f32[4,1], index: 2, kind: input, shape index: {}]   ;;  %s759_s3 = inlined_call_operand.hbm [shape: f32[2,4,256], index: 3, kind: output, shape index: {}]  }
   0x1   :  { %10 = vsyncpa [#allocation3 + $0x1], 0 }
   0x2   :  { %11 = vsyncpa [#allocation4], 0 }
   0x3   :  { %13 = vsyncpa [#allocation4 + $0x1], 0  ;;  %s590_s12 = smov 0   ;;  %s592_s13 = smov 0  }
   0x4   :  { %s594_s14 = smov 0   ;;  %s596_s15 = smov 0  }
   0x5   :  { %s598_s16 = smov 0   ;;  %s600_s17 = smov 0  }
   0x6   :  { %s602_s18 = smov 0   ;;  %s604_s19 = smov 0  }
   0x7 LB: > { %s344_s20 = sadd.s32 4294967295, %s565_s19   ;;  %s345_s21 = sadd.s32 4294967294, %s565_s19   ;;  %s565_s19 = sphi %s604_s19, %s19_s19   ;;  %s561_s18 = sphi %s602_s18, %s775_s18   ;;  %s557_s17 = sphi %s600_s17, %s774_s17   ;;  %s553_s16 = sphi %s598_s16, %s773_s16   ;;  %s549_s15 = sphi %s596_s15, %s772_s15   ;;  %s545_s14 = sphi %s594_s14, %s771_s14   ;;  %s541_s13 = sphi %s592_s13, %s770_s13   ;;  %s537_s12 = sphi %s590_s12, %s769_s12  }
   0x8   : > { %s28_s22 = sadd.s32 1, %s557_s17  ;;  %s31_s23 = sadd.s32 1, %s561_s18 }
   0x9   : > { %p29_p0 = scmp.ge.s32.totalorder %s28_s22, 2  ;;  %s40_s24 = sadd.s32 1, %s545_s14 }
   0xa   : > { %p47_p1 = scmp.ne.s32.totalorder %s545_s14, %s541_s13  ;;  %p48_p2 = scmp.eq.s32.totalorder %s565_s19, 0 }
   0xb   : > { %s777_s22 = smov (%p29_p0, %s28_s22), 0  ;;  %s779_s23 = smov (!%p29_p0, %s31_s23), %s561_s18 }
   0xc   : > { %s36_s25 = ssub.s32 %s557_s17, %s777_s22  ;;  %p643_p3 = por %p48_p2, %p47_p1 }
   0xd   : > { %p33_p4 = scmp.ge.s32.totalorder %s779_s23, 2  ;;  %p53_p5 = scmp.ne.s32.totalorder %s541_s13, %s537_s12 }
   0xe   : > { %p54_p6 = scmp.eq.s32.totalorder %s344_s20, 0  ;;  %p121_p7 = scmp.eq.s32.totalorder %s344_s20, 3 }
   0xf   : > { %s781_s23 = smov (%p33_p4, %s779_s23), 0  ;;  %p127_p10 = scmp.eq.s32.totalorder %s345_s21, 3 }
  0x10   : > { %762 = sst [smem:[#allocation8_spill]] %s781_s23  ;;  %p651_p8 = por %p54_p6, %p53_p5 }
  0x11   : > { %p655_p9 = por %p121_p7, %p47_p1  ;;  %s35_s29 = ssub.s32 %s561_s18, %s781_s23 }
  0x12   : > { %s37_s30 = sor.u32 %s36_s25, %s35_s29  ;;  %p661_p12 = por %p127_p10, %p53_p5 }
  0x13   : > { %p38_p11 = scmp.eq.s32.totalorder %s37_s30, 0  ;;  %p371_p13 = scmp.lt.s32.totalorder %s565_s19, 4 }
  0x14   : > { %s765_s4 = scalar_select %p661_p12, 1, 0 }
  0x15   : > { %s153_s5 = sand.u32 1, %s545_s14   ;;  %s349_s8 = sshll.u32 %s561_s18, 1 }
  0x16   : > { %s668_s6 = scalar_select %p38_p11, %s545_s14, %s40_s24  }
  0x17   : > { %s348_s7 = sshll.u32 %s153_s5, 2  ;;  %s162_s9 = sadd.s32 %s557_s17, %s349_s8 }
  0x18   : > { %s157_s10 = scalar_lea.vmem [#allocation2], %s348_s7  ;;  %s350_s20 = sshll.u32 %s162_s9, 6 }
  0x19   : > { %s166_s11 = sshll.u32 %s157_s10, 4  ;;  %s164_s25 = scalar_lea.hbm %s756_s0, %s350_s20  ;;  %s167_s11 = int_to_ptr.vmem [resolvable:$true] %s166_s11 }
  0x1a   : > { %p677_p0 = pnand %p371_p13, %p643_p3  ;;  %p351_p1 = scmp.ge.s32.totalorder %s565_s19, 1 }
  0x1b   : > { %p171_p2 = scmp.lt.s32.totalorder %s565_s19, 5  ;;  %s154_s24 = scalar_lea.sflag [#allocation3], %s153_s5 }
  0x1c   : > { %p443_p4 = pneg %p677_p0  ;;  %s454_s30 = scalar_lea.vmem %s167_s11, 64 }
  0x1d   : > { %p455_p5 = scmp.ne.s32.totalorder %s167_s11, %s454_s30  ;;  %s567_s7 = smov [#allocation2]  }
  0x1e   : > { %s459_s8 = sshll.u32 %s567_s7, 4  ;;  %s460_s8 = int_to_ptr.vmem [resolvable:$false] %s459_s8 }
  0x1f   : > { %p457_p6 = pnand %p455_p5, %p443_p4  ;;  %s461_s23 = scalar_lea.vmem %s460_s8, 128 }
  0x20   : > { %p462_p10 = scmp.lt.s32.totalorder %s167_s11, %s460_s8  ;;  %p463_p11 = scmp.lt.s32.totalorder %s461_s23, %s454_s30 }
  0x21   : > { %p458_p7 = pneg %p457_p6 }
  0x22   : > { %p464_p3 = por %p463_p11, %p462_p10 }
  0x24   : > { %p465_p13 = pnand %p464_p3, %p458_p7 }
  0x26   : > { %468 = shalt.err (!%p465_p13)
}
  0x27   : > { %366 = dma.hbm_to_vmem [thread:$0]  (!%p677_p0), %s164_s25, 64, %s167_s11, %s154_s24  }
  0x28   : > { %p172_p12 = pnand %p351_p1, %p171_p2 }
  0x29   : > { %s692_s26 = sand.u32 (!%p172_p12), 1, %s541_s13  }
  0x2a   : > { %175 = sbr.rel (%p172_p12) target bundleno = 193 (0xc1), region = 32  ;;  %s352_s5 = sshll.u32 (!%p172_p12), %s692_s26, 2 }
  0x2b   : > { %s178_s9 = scalar_lea.sflag (!%p172_p12), [#allocation3], %s692_s26  ;;  %s181_s10 = scalar_lea.vmem (!%p172_p12), [#allocation2], %s352_s5 }
  0x2f   : > { %528 = dma.done.wait (%p651_p8), %s178_s9, 64  }
  0x30   : > { %530 = vsyncadd (%p651_p8), %s178_s9, 4294967232  ;;  %v568_v0 = vmov 0   ;;  %v227_v1 = vld [vmem:[%s757_s1] sm:$0xf]  ;;  %vm205_vm0 = vcmask 1043456   ;;  %s355_s27 = sshll.u32 %s553_s16, 1 }
  0x31   : > { %438 = vset.pattern.permute.xlu0 %v568_v0  ;;  %v228_v2 = vld [vmem:[%s758_s2] sm:$0xf]  ;;  %s255_s29 = sadd.s32 %s549_s15, %s355_s27  ;;  %s203_s30 = scalar_lea.vmem [#allocation5], %s352_s5 }
  0x32   : > { %232 = vperm.xlu0 %438, %v227_v1   ;;  %v204_v3 = vld [vmem:[%s181_s10] sm:$0xf]  ;;  %s356_s24 = sshll.u32 %s255_s29, 6  ;;  %s259_s7 = sshll.u32 %s203_s30, 4  ;;  %s260_s7 = int_to_ptr.vmem [resolvable:$true] %s259_s7 }
  0x33   : > { %v206_v4 = vsel %vm205_vm0, %v204_v3, 0.0  ;;  %s257_s9 = scalar_lea.hbm %s759_s3, %s356_s24  ;;  %s244_s10 = scalar_lea.sflag [#allocation4], %s692_s26 }
  0x34   : > { %v207_v5 = vrot.slane %v206_v4, 4  ;;  %s469_s11 = scalar_lea.vmem %s260_s7, 64  ;;  %s569_s15 = smov [#allocation5]  }
  0x35   : > { %p470_p8 = scmp.ne.s32.totalorder %s260_s7, %s469_s11  ;;  %s473_s16 = sshll.u32 %s569_s15, 4  ;;  %s474_s16 = int_to_ptr.vmem [resolvable:$false] %s473_s16 }
  0x36   : > { %238 = vperm.xlu0 %438, %v228_v2   ;;  %v208_v6 = vadd.f32 %v207_v5, %v206_v4  ;;  %s475_s5 = scalar_lea.vmem %s474_s16, 128  ;;  %p476_p1 = scmp.lt.s32.totalorder %s260_s7, %s474_s16 }
  0x37   : > { %p471_p12 = pnand %p470_p8, %p655_p9  ;;  %p477_p2 = scmp.lt.s32.totalorder %s475_s5, %s469_s11 }
  0x38   : > { %v209_v7 = vrot.slane %v208_v6, 2 }
  0x39   : > { %p472_p0 = pneg %p471_p12  ;;  %p478_p4 = por %p477_p2, %p476_p1 }
  0x3a   : > { %v210_v8 = vadd.f32 %v209_v7, %v208_v6 }
  0x3b   : > { %p479_p5 = pnand %p478_p4, %p472_p0 }
  0x3c   : > { %v211_v9 = vrot.slane %v210_v8, 1 }
  0x3e   : > { %v212_v10 = vadd.f32 %v211_v9, %v210_v8 }
  0x40   : > { %v214_v11 = vmul.f32 0.25, %v212_v10 }
  0x42   : > { %v215_v12 = vsub.f32 %v204_v3, %v214_v11 }
  0x44   : > { %v216_v13 = vmul.f32 %v215_v12, %v215_v12 }
  0x46   : > { %v217_v14 = vsel %vm205_vm0, %v216_v13, 0.0 }
  0x47   : > { %v218_v15 = vrot.slane %v217_v14, 4 }
  0x49   : > { %v219_v16 = vadd.f32 %v218_v15, %v217_v14 }
  0x4b   : > { %v220_v17 = vrot.slane %v219_v16, 2 }
  0x4d   : > { %v221_v18 = vadd.f32 %v220_v17, %v219_v16 }
  0x4f   : > { %v222_v19 = vrot.slane %v221_v18, 1 }
  0x51   : > { %v223_v20 = vadd.f32 %v222_v19, %v221_v18 }
  0x53   : > { %v224_v21 = vmul.f32 0.25, %v223_v20 }
  0x55   : > { %v225_v22 = vadd.f32 1e-05, %v224_v21 }
  0x57   : > { %439 = vrsqrt.f32 %v225_v22 }
  0x64   : > { %v440_v23 = vpop.eup %439 }
  0x65   : > { %v229_v24 = vmul.f32 %v440_v23, %v215_v12 }
  0xad   : > { %v233_v25 = vpop.permute.xlu0 %232 }
  0xae   : > { %v235_v26 = vmul.f32 %v233_v25, %v229_v24 }
  0xb1   : > { %v239_v27 = vpop.permute.xlu0 %238 }
  0xb2   : > { %v241_v28 = vadd.f32 %v239_v27, %v235_v26 }
  0xb4   : > { %242 = vst [vmem:[%s203_s30] sm:$0xf] %v241_v28 }
  0xb5   : > { %482 = shalt.err (!%p479_p5)
}
  0xb6   : > { %s483_s20 = scalar_lea.hbm %s257_s9, 64  ;;  %s487_s25 = scalar_lea.hbm %s759_s3, 256 }
  0xb7   : > { %p484_p6 = scmp.ne.s32.totalorder %s257_s9, %s483_s20  ;;  %p488_p11 = scmp.lt.s32.totalorder %s257_s9, %s759_s3 }
  0xb8   : > { %p489_p3 = scmp.lt.s32.totalorder %s487_s25, %s483_s20 }
  0xb9   : > { %p485_p7 = pnand %p484_p6, %p655_p9 }
  0xba   : > { %p490_p13 = por %p489_p3, %p488_p11 }
  0xbb   : > { %p486_p10 = pneg %p485_p7 }
  0xbd   : > { %p491_p8 = pnand %p490_p13, %p486_p10 }
  0xbf   : > { %494 = shalt.err (!%p491_p8)
}
  0xc0   : > { %361 = dma.vmem_to_hbm [thread:$0]  (%p655_p9), %s260_s7, 64, %s257_s9, %s244_s10  }
  0xc1 PF: > { %p372_p12 = scmp.ge.s32.totalorder %s565_s19, 2  ;;  %s271_s24 = sand.u32 1, %s537_s12  }
  0xc2   : > { %p767_p0 = scmp.ne.s32.totalorder %s765_s4, 0  ;;  %s272_s30 = scalar_lea.sflag [#allocation4], %s271_s24 }
  0xc4   : > { %p368_p1 = pnand %p372_p12, %p767_p0 }
  0xc6   : > { %p369_p2 = pneg %p368_p1 }
  0xc8   : > { %532 = dma.done.wait (%p369_p2), %s272_s30, 64  }
  0xc9   : > { %534 = vsyncadd (%p369_p2), %s272_s30, 4294967232  ;;  %s19_s19 = sadd.s32 1, %s565_s19   ;;  %s768_s28 = sld [smem:[#allocation8_spill]] }
  0xca   : > { %p16_p4 = scmp.ge.s32.totalorder %s19_s19, 6   ;;  %s769_s12 = smov %s541_s13 }
  0xcb   : > { %s770_s13 = smov %s545_s14  ;;  %s771_s14 = smov %s668_s6 }
  0xcc   : > { %s772_s15 = smov %s557_s17  ;;  %s773_s16 = smov %s561_s18 }
  0xcd   : > { %s774_s17 = smov %s777_s22  ;;  %18 = sbr.rel (!%p16_p4) target bundleno = 7 (0x7), region = 77 }
  0xcf   : > { %s775_s18 = smov %s768_s28 }
  0xd2   :  { %277 = vsyncpa [#allocation3], 1 }
  0xd3   :  { %279 = vsyncpa [#allocation3 + $0x1], 1 }
  0xd4   :  { %280 = vsyncpa [#allocation4], 1 }
  0xd5   :  { %282 = vsyncpa [#allocation4 + $0x1], 1 }

</bundles_post_ra>
